<compile_context>
chip_gen: v6e
topology: v6e:2x2x1
jax: 0.10.0
libtpu: 0.0.40
codegen_flags: <defaults>
</compile_context>

<pallas_src>
import functools

import jax
import jax.numpy as jnp
from jax.experimental import pallas as pl
from jax.experimental.pallas import tpu as pltpu

HIDDEN = 128


def _round_up(x, m):
    return (x + m - 1) // m * m


def _value_net_kernel(xt_ref, w1_ref, b1_ref, w2_ref, b2_ref, w3_ref, b3_ref,
                      o_ref, *, compute_dtype):
    cd = compute_dtype
    xt = xt_ref[...].astype(cd)                                        # (S, TB)
    # layer 1: (H, S) @ (S, TB) -> (H, TB) on the MXU, f32 accumulate
    z1 = jnp.dot(w1_ref[...].astype(cd), xt,
                 preferred_element_type=jnp.float32) + b1_ref[...]
    h1 = jnp.tanh(z1)                                                  # f32 (EUP)
    # layer 2: (H, H) @ (H, TB) -> (H, TB)
    z2 = jnp.dot(w2_ref[...].astype(cd), h1.astype(cd),
                 preferred_element_type=jnp.float32) + b2_ref[...]
    h2 = jnp.tanh(z2)                                                  # f32
    # layer 3 (out_features == 1): VPU multiply + sublane reduce instead of a
    # degenerate N=1 MXU matvec; result lands lane-dense as (1, TB).
    v = jnp.sum(h2 * w3_ref[...], axis=0, keepdims=True) + b3_ref[0, 0]
    o_ref[...] = v.astype(o_ref.dtype)


def value_network_forward(x, params, *, block_b=1024, compute_dtype=jnp.float32):
    """x: (B, state_dim) f32, params in PyTorch (out, in) layout -> (B, 1) f32."""
    w1, b1, w2, b2, w3, b3 = params
    B, S = x.shape
    H = w1.shape[0]

    TB = min(block_b, _round_up(B, 128))      # lane-dense batch tile, multiple of 128
    B_pad = _round_up(B, TB)
    num_tiles = B_pad // TB

    # transpose to (features, batch) and pad batch to a whole number of tiles
    xt = jnp.pad(x.T, ((0, 0), (0, B_pad - B)))            # (S, B_pad)
    b1t = b1.reshape(H, 1)
    b2t = b2.reshape(H, 1)
    w3t = w3.reshape(1, H).reshape(H, 1)                   # (H, 1) column
    b3s = b3.reshape(1, 1)                                 # scalar for SMEM

    kernel = functools.partial(_value_net_kernel, compute_dtype=compute_dtype)

    out = pl.pallas_call(
        kernel,
        out_shape=jax.ShapeDtypeStruct((1, B_pad), jnp.float32),
        grid=(num_tiles,),
        in_specs=[
            pl.BlockSpec((S, TB), lambda i: (0, i)),             # x^T tile (pipelined)
            pl.BlockSpec((H, S), lambda i: (0, 0)),              # W1  (resident)
            pl.BlockSpec((H, 1), lambda i: (0, 0)),              # b1  (resident)
            pl.BlockSpec((H, H), lambda i: (0, 0)),              # W2  (resident)
            pl.BlockSpec((H, 1), lambda i: (0, 0)),              # b2  (resident)
            pl.BlockSpec((H, 1), lambda i: (0, 0)),              # W3^T (resident)
            pl.BlockSpec(memory_space=pltpu.MemorySpace.SMEM),   # b3 scalar in SMEM
        ],
        out_specs=pl.BlockSpec((1, TB), lambda i: (0, i)),       # lane-dense output
        compiler_params=pltpu.CompilerParams(
            dimension_semantics=("parallel",),                   # megacore split (v7x)
        ),
    )(xt, w1, b1t, w2, b2t, w3t, b3s)

    return out[0, :B].reshape(B, 1)


def init_params(key, state_dim):
    """PyTorch nn.Linear default init, PyTorch (out_features, in_features) layout."""
    def linear(key, fan_in, fan_out):
        kw, kb = jax.random.split(key)
        bound = 1.0 / jnp.sqrt(jnp.float32(fan_in))
        w = jax.random.uniform(kw, (fan_out, fan_in), jnp.float32, -bound, bound)
        b = jax.random.uniform(kb, (fan_out,), jnp.float32, -bound, bound)
        return w, b

    k1, k2, k3 = jax.random.split(key, 3)
    w1, b1 = linear(k1, state_dim, HIDDEN)
    w2, b2 = linear(k2, HIDDEN, HIDDEN)
    w3, b3 = linear(k3, HIDDEN, 1)
    return (w1, b1, w2, b2, w3, b3)


def reference_forward(x, params):
    w1, b1, w2, b2, w3, b3 = params
    h1 = jnp.tanh(x @ w1.T + b1)
    h2 = jnp.tanh(h1 @ w2.T + b2)
    return h2 @ w3.T + b3


if __name__ == "__main__":
    key = jax.random.PRNGKey(0)
    k_x, k_p, k_x2 = jax.random.split(key, 3)

    state_dim = 4  # CartPole observation dim
    params = init_params(k_p, state_dim)

    # 1) tiny batch (original shape), f32 path
    x_small = jax.random.normal(k_x, (8, state_dim), dtype=jnp.float32)
    out_small = jax.block_until_ready(value_network_forward(x_small, params))
    ref_small = reference_forward(x_small, params)
    assert out_small.shape == (8, 1), out_small.shape
    assert jnp.allclose(out_small, ref_small, atol=1e-5, rtol=1e-5)

    # 2) multi-tile batch: exercises the pipelined batch grid + padding, f32 path
    x_big = jax.random.normal(k_x2, (300, state_dim), dtype=jnp.float32)
    out_big = jax.block_until_ready(value_network_forward(x_big, params, block_b=128))
    ref_big = reference_forward(x_big, params)
    assert out_big.shape == (300, 1), out_big.shape
    assert jnp.allclose(out_big, ref_big, atol=1e-5, rtol=1e-5)

    # 3) bf16 matmul path (v6e/v7x MXU-native); f32 accumulation, tanh/bias in f32
    out_bf16 = jax.block_until_ready(
        value_network_forward(x_big, params, block_b=128, compute_dtype=jnp.bfloat16))
    assert out_bf16.shape == (300, 1), out_bf16.shape
    assert jnp.allclose(out_bf16, ref_big, atol=5e-2, rtol=5e-2)

    print("KERNEL_OK")
</pallas_src>

<mosaic_0001>
module attributes {stable_mosaic.version = 11 : i64} {
  func.func @_value_net_kernel(%arg0: i32, %arg1: memref<4x128xf32, #tpu.memory_space<vmem>>, %arg2: memref<128x4xf32, #tpu.memory_space<vmem>>, %arg3: memref<128x1xf32, #tpu.memory_space<vmem>>, %arg4: memref<128x128xf32, #tpu.memory_space<vmem>>, %arg5: memref<128x1xf32, #tpu.memory_space<vmem>>, %arg6: memref<128x1xf32, #tpu.memory_space<vmem>>, %arg7: memref<1x1xf32, #tpu.memory_space<smem>>, %arg8: memref<1x128xf32, #tpu.memory_space<vmem>>) attributes {dimension_semantics = [#tpu.dimension_semantics<parallel>], iteration_bounds = array<i64: 1>, scalar_prefetch = 0 : i64, scratch_operands = 0 : i64, tpu.core_type = #tpu.core_type<tc>, window_params = [{transform_indices = @transform_0, window_bounds = array<i64: 4, 128>}, {pipeline_mode = #tpu.pipeline_mode<synchronous>, transform_indices = @transform_1, window_bounds = array<i64: 128, 4>}, {pipeline_mode = #tpu.pipeline_mode<synchronous>, transform_indices = @transform_2, window_bounds = array<i64: 128, 1>}, {pipeline_mode = #tpu.pipeline_mode<synchronous>, transform_indices = @transform_3, window_bounds = array<i64: 128, 128>}, {pipeline_mode = #tpu.pipeline_mode<synchronous>, transform_indices = @transform_4, window_bounds = array<i64: 128, 1>}, {pipeline_mode = #tpu.pipeline_mode<synchronous>, transform_indices = @transform_5, window_bounds = array<i64: 128, 1>}, {transform_indices = @transform_6, window_bounds = array<i64: 1, 1>}, {transform_indices = @transform_7, window_bounds = array<i64: 1, 128>}]} {
    %c0 = arith.constant 0 : index
    %c0_0 = arith.constant 0 : index
    %0 = vector.load %arg1[%c0, %c0_0] : memref<4x128xf32, #tpu.memory_space<vmem>>, vector<4x128xf32>
    %c0_1 = arith.constant 0 : index
    %c0_2 = arith.constant 0 : index
    %1 = vector.load %arg2[%c0_1, %c0_2] : memref<128x4xf32, #tpu.memory_space<vmem>>, vector<128x4xf32>
    %cst = arith.constant dense<0.000000e+00> : vector<128x128xf32>
    %2 = tpu.matmul %1, %0, %cst {dimension_numbers = #tpu.dot_dimension_numbers<[1], [0], [0], [1], [0, 0, 1, 1], [], []>} : vector<128x4xf32>, vector<4x128xf32>, vector<128x128xf32> -> vector<128x128xf32>
    %c0_3 = arith.constant 0 : index
    %c0_4 = arith.constant 0 : index
    %3 = vector.load %arg3[%c0_3, %c0_4] : memref<128x1xf32, #tpu.memory_space<vmem>>, vector<128x1xf32>
    %4 = vector.broadcast %3 : vector<128x1xf32> to vector<128x128xf32>
    %5 = arith.addf %2, %4 : vector<128x128xf32>
    %6 = math.tanh %5 : vector<128x128xf32>
    %c0_5 = arith.constant 0 : index
    %c0_6 = arith.constant 0 : index
    %7 = vector.load %arg4[%c0_5, %c0_6] : memref<128x128xf32, #tpu.memory_space<vmem>>, vector<128x128xf32>
    %cst_7 = arith.constant dense<0.000000e+00> : vector<128x128xf32>
    %8 = tpu.matmul %7, %6, %cst_7 {dimension_numbers = #tpu.dot_dimension_numbers<[1], [0], [0], [1], [0, 0, 1, 1], [], []>} : vector<128x128xf32>, vector<128x128xf32>, vector<128x128xf32> -> vector<128x128xf32>
    %c0_8 = arith.constant 0 : index
    %c0_9 = arith.constant 0 : index
    %9 = vector.load %arg5[%c0_8, %c0_9] : memref<128x1xf32, #tpu.memory_space<vmem>>, vector<128x1xf32>
    %10 = vector.broadcast %9 : vector<128x1xf32> to vector<128x128xf32>
    %11 = arith.addf %8, %10 : vector<128x128xf32>
    %12 = math.tanh %11 : vector<128x128xf32>
    %c0_10 = arith.constant 0 : index
    %c0_11 = arith.constant 0 : index
    %13 = vector.load %arg6[%c0_10, %c0_11] : memref<128x1xf32, #tpu.memory_space<vmem>>, vector<128x1xf32>
    %14 = vector.broadcast %13 : vector<128x1xf32> to vector<128x128xf32>
    %15 = arith.mulf %12, %14 : vector<128x128xf32>
    %cst_12 = arith.constant dense<0.000000e+00> : vector<128xf32>
    %16 = vector.multi_reduction <add>, %15, %cst_12 [0] : vector<128x128xf32> to vector<128xf32>
    %17 = vector.shape_cast %16 : vector<128xf32> to vector<1x128xf32>
    %c0_13 = arith.constant 0 : index
    %c0_14 = arith.constant 0 : index
    %18 = memref.load %arg7[%c0_13, %c0_14] : memref<1x1xf32, #tpu.memory_space<smem>>
    %19 = vector.broadcast %18 : f32 to vector<1x128xf32>
    %20 = arith.addf %17, %19 : vector<1x128xf32>
    %c0_15 = arith.constant 0 : index
    %c0_16 = arith.constant 0 : index
    %21 = vector.load %arg8[%c0_15, %c0_16] : memref<1x128xf32, #tpu.memory_space<vmem>>, vector<1x128xf32>
    tpu.vector_store %arg8[%c0_15, %c0_16], %20 {strides = array<i32>} : memref<1x128xf32, #tpu.memory_space<vmem>>, vector<1x128xf32>,
    return
  }
  func.func @transform_0(%arg0: i32) -> (i32, i32) {
    %c0_i32 = arith.constant 0 : i32
    %c0_i32_0 = arith.constant 0 : i32
    return %c0_i32, %arg0 : i32, i32
  }
  func.func @transform_1(%arg0: i32) -> (i32, i32) {
    %c0_i32 = arith.constant 0 : i32
    %c0_i32_0 = arith.constant 0 : i32
    %c0_i32_1 = arith.constant 0 : i32
    return %c0_i32, %c0_i32_0 : i32, i32
  }
  func.func @transform_2(%arg0: i32) -> (i32, i32) {
    %c0_i32 = arith.constant 0 : i32
    %c0_i32_0 = arith.constant 0 : i32
    %c0_i32_1 = arith.constant 0 : i32
    return %c0_i32, %c0_i32_0 : i32, i32
  }
  func.func @transform_3(%arg0: i32) -> (i32, i32) {
    %c0_i32 = arith.constant 0 : i32
    %c0_i32_0 = arith.constant 0 : i32
    %c0_i32_1 = arith.constant 0 : i32
    return %c0_i32, %c0_i32_0 : i32, i32
  }
  func.func @transform_4(%arg0: i32) -> (i32, i32) {
    %c0_i32 = arith.constant 0 : i32
    %c0_i32_0 = arith.constant 0 : i32
    %c0_i32_1 = arith.constant 0 : i32
    return %c0_i32, %c0_i32_0 : i32, i32
  }
  func.func @transform_5(%arg0: i32) -> (i32, i32) {
    %c0_i32 = arith.constant 0 : i32
    %c0_i32_0 = arith.constant 0 : i32
    %c0_i32_1 = arith.constant 0 : i32
    return %c0_i32, %c0_i32_0 : i32, i32
  }
  func.func @transform_6(%arg0: i32) -> (i32, i32) {
    %c0_i32 = arith.constant 0 : i32
    %c0_i32_0 = arith.constant 0 : i32
    %c0_i32_1 = arith.constant 0 : i32
    return %c0_i32, %c0_i32_0 : i32, i32
  }
  func.func @transform_7(%arg0: i32) -> (i32, i32) {
    %c0_i32 = arith.constant 0 : i32
    %c0_i32_0 = arith.constant 0 : i32
    return %c0_i32, %arg0 : i32, i32
  }
}

</mosaic_0001>

<bundles_post_ra>
// kernel: tpu_custom_call.1
= control target key start
LH: loop header
LB: loop body
LE: loop exit
PB: predicated region body
PF: predicated region fallthrough
CT: control target
= control target key end

     0   :  { %vm190_vm0 = vcmask 1043456   ;;  %vm141_vm1 = vcmask 31744   ;;  %v1049_v5 = vmov 0   ;;  %s1368_s0 = inlined_call_operand.vmem [shape: f32[4,128], index: 0, kind: input, shape index: {}]   ;;  %s1369_s1 = inlined_call_operand.vmem [shape: f32[128,4], index: 1, kind: input, shape index: {}]   ;;  %s1370_s2 = inlined_call_operand.vmem [shape: f32[128,1], index: 2, kind: input, shape index: {}]   ;;  %s1371_s3 = inlined_call_operand.vmem [shape: f32[128,128], index: 3, kind: input, shape index: {}]   ;;  %s1372_s4 = inlined_call_operand.vmem [shape: f32[128,1], index: 4, kind: input, shape index: {}]   ;;  %s1373_s5 = inlined_call_operand.vmem [shape: f32[128,1], index: 5, kind: input, shape index: {}]   ;;  %s1374_s6 = inlined_call_operand.<no memory space> [shape: f32[1,1], index: 6, kind: input, shape index: {}]   ;;  %s1375_s7 = inlined_call_operand.hbm [shape: f32[1,128], index: 7, kind: output, shape index: {}]  }
   0x1   :  { %v28_v0 = vld [vmem:[%s1368_s0] sm:$0xf]  ;;  %v30_v2 = vld [vmem:[%s1369_s1 + $0x8] sm:$0xff]  ;;  %v60_v3 = vld [vmem:[%s1370_s2 + $0x78] sm:$0xff]  ;;  %961 = vset.pattern.permute.xlu0 %v1049_v5  ;;  %962 = vset.pattern.permute.xlu1 %v1049_v5 }
   0x2   :  { %v29_v1 = vld [vmem:[%s1369_s1] sm:$0xff]  ;;  %845 = vmatprep.subr.msk.mxu0 %vm190_vm0, %v28_v0  ;;  %v31_v4 = vld [vmem:[%s1369_s1 + $0x10] sm:$0xff]  ;;  %v58_v6 = vld [vmem:[%s1370_s2 + $0x68] sm:$0xff]  ;;  %138 = vperm.xlu0 %961, %v60_v3  }
   0x3   :  { %847 = vmatprep.mubr.msk.f32.mxu0 %vm141_vm1, %v29_v1  ;;  %846 = vmatpush3.msk.msra.mxu0 %vm190_vm0, %v28_v0  ;;  %v32_v7 = vld [vmem:[%s1369_s1 + $0x18] sm:$0xff]  ;;  %v59_v8 = vld [vmem:[%s1370_s2 + $0x70] sm:$0xff]  ;;  %v33_v9 = vld [vmem:[%s1369_s1 + $0x20] sm:$0xff] }
   0x4   :  { %848 = vmatmul.mubr.msk.f32.vlgmr.msra.gmra.mxu0 %vm141_vm1, %v30_v2  ;;  %128 = vperm.xlu1 %962, %v58_v6   ;;  %v57_v10 = vld [vmem:[%s1370_s2 + $0x60] sm:$0xff]  ;;  %v34_v11 = vld [vmem:[%s1369_s1 + $0x28] sm:$0xff]  ;;  %v56_v12 = vld [vmem:[%s1370_s2 + $0x58] sm:$0xff] }
   0x5   :  { %850 = vmatprep.mubr.msk.f32.mxu0 %vm141_vm1, %v31_v4  ;;  %v35_v13 = vld [vmem:[%s1369_s1 + $0x30] sm:$0xff]  ;;  %v36_v15 = vld [vmem:[%s1369_s1 + $0x38] sm:$0xff]  ;;  %v54_v16 = vld [vmem:[%s1370_s2 + $0x48] sm:$0xff] }
   0x6   :  { %133 = vperm.xlu0 %961, %v59_v8   ;;  %v55_v14 = vld [vmem:[%s1370_s2 + $0x50] sm:$0xff]  ;;  %v37_v17 = vld [vmem:[%s1369_s1 + $0x40] sm:$0xff]  ;;  %v38_v19 = vld [vmem:[%s1369_s1 + $0x48] sm:$0xff] }
   0x7   :  { %v53_v18 = vld [vmem:[%s1370_s2 + $0x40] sm:$0xff]  ;;  %v52_v20 = vld [vmem:[%s1370_s2 + $0x38] sm:$0xff]  ;;  %v39_v21 = vld [vmem:[%s1369_s1 + $0x50] sm:$0xff] }
   0x8   :  { %851 = vmatmul.mubr.msk.f32.gmra.mxu0 %vm141_vm1, %v32_v7  ;;  %123 = vperm.xlu1 %962, %v57_v10   ;;  %v51_v22 = vld [vmem:[%s1370_s2 + $0x30] sm:$0xff]  ;;  %v40_v23 = vld [vmem:[%s1369_s1 + $0x58] sm:$0xff]  ;;  %v50_v24 = vld [vmem:[%s1370_s2 + $0x28] sm:$0xff] }
   0x9   :  { %853 = vmatprep.mubr.msk.f32.mxu0 %vm141_vm1, %v33_v9  ;;  %v41_v25 = vld [vmem:[%s1369_s1 + $0x60] sm:$0xff] }
   0xa   :  { %118 = vperm.xlu0 %961, %v56_v12  }
   0xc   :  { %854 = vmatmul.mubr.msk.f32.gmra.mxu0 %vm141_vm1, %v34_v11  ;;  %113 = vperm.xlu1 %962, %v55_v14  }
   0xd   :  { %856 = vmatprep.mubr.msk.f32.mxu0 %vm141_vm1, %v35_v13 }
   0xe   :  { %108 = vperm.xlu0 %961, %v54_v16  }
  0x10   :  { %857 = vmatmul.mubr.msk.f32.gmra.mxu0 %vm141_vm1, %v36_v15  ;;  %103 = vperm.xlu1 %962, %v53_v18  }
  0x11   :  { %859 = vmatprep.mubr.msk.f32.mxu0 %vm141_vm1, %v37_v17 }
  0x12   :  { %98 = vperm.xlu0 %961, %v52_v20  }
  0x14   :  { %860 = vmatmul.mubr.msk.f32.gmra.mxu0 %vm141_vm1, %v38_v19  ;;  %93 = vperm.xlu1 %962, %v51_v22  }
  0x15   :  { %862 = vmatprep.mubr.msk.f32.mxu0 %vm141_vm1, %v39_v21 }
  0x16   :  { %13 = vsyncpa [#allocation4], 0  ;;  %v49_v26 = vld [vmem:[%s1370_s2 + $0x20] sm:$0xff]  ;;  %88 = vperm.xlu0 %961, %v50_v24   ;;  %v42_v27 = vld [vmem:[%s1369_s1 + $0x68] sm:$0xff]  ;;  %s1050_s8 = smov [#allocation3]  }
  0x17   :  { %v48_v28 = vld [vmem:[%s1370_s2 + $0x18] sm:$0xff]  ;;  %v43_v29 = vld [vmem:[%s1369_s1 + $0x70] sm:$0xff]  ;;  %v46_v32 = vld [vmem:[%s1370_s2 + $0x8] sm:$0xff]  ;;  %s771_s9 = sshll.u32 %s1050_s8, 4  ;;  %s772_s9 = int_to_ptr.vmem [resolvable:$true] %s771_s9 }
  0x18   :  { %863 = vmatmul.mubr.msk.f32.gmra.mxu0 %vm141_vm1, %v40_v23  ;;  %83 = vperm.xlu1 %962, %v49_v26   ;;  %v47_v30 = vld [vmem:[%s1370_s2 + $0x10] sm:$0xff]  ;;  %v44_v31 = vld [vmem:[%s1369_s1 + $0x78] sm:$0xff]  ;;  %v45_v33 = vld [vmem:[%s1370_s2] sm:$0xff]  ;;  %s1027_s10 = scalar_lea.vmem %s772_s9, 16  ;;  %s1031_s0 = scalar_lea.vmem %s772_s9, 32 }
  0x19   :  { %865 = vmatprep.mubr.msk.f32.mxu0 %vm141_vm1, %v41_v25  ;;  %v371_v34 = vld [vmem:[%s1372_s4] sm:$0xff]  ;;  %v372_v35 = vld [vmem:[%s1372_s4 + $0x8] sm:$0xff]  ;;  %v373_v36 = vld [vmem:[%s1372_s4 + $0x10] sm:$0xff]  ;;  %p1028_p0 = scmp.ne.s32.totalorder %s772_s9, %s1027_s10  ;;  %p1032_p1 = scmp.lt.s32.totalorder %s772_s9, %s772_s9 }
  0x1a   :  { %78 = vperm.xlu0 %961, %v48_v28   ;;  %v374_v37 = vld [vmem:[%s1372_s4 + $0x18] sm:$0xff]  ;;  %v375_v38 = vld [vmem:[%s1372_s4 + $0x20] sm:$0xff]  ;;  %v376_v39 = vld [vmem:[%s1372_s4 + $0x28] sm:$0xff]  ;;  %p1033_p2 = scmp.lt.s32.totalorder %s1031_s0, %s1027_s10 }
  0x1b   :  { %v377_v40 = vld [vmem:[%s1372_s4 + $0x30] sm:$0xff]  ;;  %v378_v41 = vld [vmem:[%s1372_s4 + $0x38] sm:$0xff]  ;;  %v379_v42 = vld [vmem:[%s1372_s4 + $0x40] sm:$0xff] }
  0x1c   :  { %866 = vmatmul.mubr.msk.f32.gmra.mxu0 %vm141_vm1, %v42_v27  ;;  %73 = vperm.xlu1 %962, %v47_v30   ;;  %v380_v43 = vld [vmem:[%s1372_s4 + $0x48] sm:$0xff]  ;;  %v628_v44 = vld [vmem:[%s1373_s5] sm:$0xff]  ;;  %v381_v46 = vld [vmem:[%s1372_s4 + $0x50] sm:$0xff]  ;;  %p1034_p3 = por %p1033_p2, %p1032_p1 }
  0x1d   :  { %868 = vmatprep.mubr.msk.f32.mxu0 %vm141_vm1, %v43_v29  ;;  %v629_v45 = vld [vmem:[%s1373_s5 + $0x8] sm:$0xff]  ;;  %v630_v47 = vld [vmem:[%s1373_s5 + $0x10] sm:$0xff]  ;;  %v382_v48 = vld [vmem:[%s1372_s4 + $0x58] sm:$0xff] }
  0x1e   :  { %68 = vperm.xlu0 %961, %v46_v32   ;;  %v631_v49 = vld [vmem:[%s1373_s5 + $0x18] sm:$0xff]  ;;  %v383_v50 = vld [vmem:[%s1372_s4 + $0x60] sm:$0xff]  ;;  %v384_v52 = vld [vmem:[%s1372_s4 + $0x68] sm:$0xff]  ;;  %p1035_p4 = pnand %p1034_p3, %p1028_p0 }
  0x1f   :  { %v632_v51 = vld [vmem:[%s1373_s5 + $0x20] sm:$0xff]  ;;  %v633_v53 = vld [vmem:[%s1373_s5 + $0x28] sm:$0xff]  ;;  %v385_v54 = vld [vmem:[%s1372_s4 + $0x70] sm:$0xff] }
  0x20   :  { %869 = vmatmul.mubr.msk.f32.gmra.mxu0 %vm141_vm1, %v44_v31  ;;  %63 = vperm.xlu1 %962, %v45_v33   ;;  %v634_v55 = vld [vmem:[%s1373_s5 + $0x30] sm:$0xff]  ;;  %v386_v56 = vld [vmem:[%s1372_s4 + $0x78] sm:$0xff]  ;;  %v636_v58 = vld [vmem:[%s1373_s5 + $0x40] sm:$0xff] }
  0x21   :  { %v635_v57 = vld [vmem:[%s1373_s5 + $0x38] sm:$0xff]  ;;  %v637_v59 = vld [vmem:[%s1373_s5 + $0x48] sm:$0xff]  ;;  %v638_v60 = vld [vmem:[%s1373_s5 + $0x50] sm:$0xff] }
  0x22   :  { %389 = vperm.xlu0 %961, %v371_v34   ;;  %v639_v61 = vld [vmem:[%s1373_s5 + $0x58] sm:$0xff]  ;;  %v640_v62 = vld [vmem:[%s1373_s5 + $0x60] sm:$0xff]  ;;  %v641_v63 = vld [vmem:[%s1373_s5 + $0x68] sm:$0xff] }
  0x23   :  { %v642_v0 = vld [vmem:[%s1373_s5 + $0x70] sm:$0xff]  ;;  %v643_v1 = vld [vmem:[%s1373_s5 + $0x78] sm:$0xff]  ;;  %v355_v2 = vld [vmem:[%s1371_s3] sm:$0xff] }
  0x24   :  { %394 = vperm.xlu1 %962, %v372_v35   ;;  %v361_v3 = vld [vmem:[%s1371_s3 + $0x30] sm:$0xff]  ;;  %903 = vmatprep.mubr.f32.mxu0 %v355_v2 }
  0x25   :  { %912 = vmatprep.mubr.f32.mxu1 %v361_v3 }
  0x26   :  { %399 = vperm.xlu0 %961, %v373_v36  }
  0x28   :  { %404 = vperm.xlu1 %962, %v374_v37  }
  0x2a   :  { %409 = vperm.xlu0 %961, %v375_v38  }
  0x2c   :  { %414 = vperm.xlu1 %962, %v376_v39  }
  0x2e   :  { %419 = vperm.xlu0 %961, %v377_v40  }
  0x30   :  { %424 = vperm.xlu1 %962, %v378_v41  }
  0x32   :  { %429 = vperm.xlu0 %961, %v379_v42  }
  0x34   :  { %434 = vperm.xlu1 %962, %v380_v43  }
  0x36   :  { %646 = vperm.xlu0 %961, %v628_v44  }
  0x38   :  { %651 = vperm.xlu1 %962, %v629_v45  }
  0x3a   :  { %439 = vperm.xlu0 %961, %v381_v46  }
  0x3c   :  { %656 = vperm.xlu1 %962, %v630_v47  }
  0x3e   :  { %444 = vperm.xlu0 %961, %v382_v48  }
  0x40   :  { %661 = vperm.xlu1 %962, %v631_v49  }
  0x42   :  { %449 = vperm.xlu0 %961, %v383_v50  }
  0x44   :  { %666 = vperm.xlu1 %962, %v632_v51  }
  0x46   :  { %454 = vperm.xlu0 %961, %v384_v52  }
  0x48   :  { %671 = vperm.xlu1 %962, %v633_v53  }
  0x4a   :  { %459 = vperm.xlu0 %961, %v385_v54  }
  0x4c   :  { %676 = vperm.xlu1 %962, %v634_v55  }
  0x4e   :  { %464 = vperm.xlu0 %961, %v386_v56  }
  0x50   :  { %681 = vperm.xlu1 %962, %v635_v57  }
  0x52   :  { %686 = vperm.xlu0 %961, %v636_v58  }
  0x54   :  { %691 = vperm.xlu1 %962, %v637_v59  }
  0x56   :  { %696 = vperm.xlu0 %961, %v638_v60  }
  0x58   :  { %701 = vperm.xlu1 %962, %v639_v61  }
  0x5a   :  { %706 = vperm.xlu0 %961, %v640_v62  }
  0x5c   :  { %711 = vperm.xlu1 %962, %v641_v63  }
  0x5e   :  { %716 = vperm.xlu0 %961, %v642_v0  }
  0x60   :  { %721 = vperm.xlu1 %962, %v643_v1  }
  0x7d   :  { %v139_v10 = vpop.permute.xlu0 %138 }
  0x7f   :  { %v129_v12 = vpop.permute.xlu1 %128 }
  0x81   :  { %v134_v15 = vpop.permute.xlu0 %133 }
  0x83   :  { %v124_v17 = vpop.permute.xlu1 %123 }
  0x85   :  { %v119_v20 = vpop.permute.xlu0 %118 }
  0x87   :  { %v114_v22 = vpop.permute.xlu1 %113 }
  0x89   :  { %v109_v26 = vpop.permute.xlu0 %108 }
  0x8b   :  { %v104_v30 = vpop.permute.xlu1 %103 }
  0x8d   :  { %v99_v33 = vpop.permute.xlu0 %98 }
  0x8f   :  { %v94_v35 = vpop.permute.xlu1 %93 }
  0x91   :  { %v89_v38 = vpop.permute.xlu0 %88 }
  0x93   :  { %v84_v41 = vpop.permute.xlu1 %83 }
  0x95   :  { %v79_v46 = vpop.permute.xlu0 %78 }
  0x97   :  { %v74_v49 = vpop.permute.xlu1 %73 }
  0x99   :  { %v69_v54 = vpop.permute.xlu0 %68 }
  0x9b   :  { %v64_v57 = vpop.permute.xlu1 %63 }
  0xc4   :  { %v1308_v4 = vpop.f32.mrf.mxu0 }
  0xc5   :  { %v266_v55 = vadd.f32 %v1308_v4, %v69_v54  ;;  %v356_v4 = vld [vmem:[%s1371_s3 + $0x8] sm:$0xff] }
  0xc6   :  { %v1310_v5 = vpop.f32.mrf.mxu0 }
  0xc7   :  { %v261_v58 = vadd.f32 %v1310_v5, %v64_v57  ;;  %v362_v5 = vld [vmem:[%s1371_s3 + $0x38] sm:$0xff] }
  0xc8   :  { %v1312_v6 = vpop.f32.mrf.mxu0 }
  0xc9   :  { %v276_v50 = vadd.f32 %v1312_v6, %v79_v46  ;;  %v357_v6 = vld [vmem:[%s1371_s3 + $0x10] sm:$0xff] }
  0xca   :  { %v1314_v7 = vpop.f32.mrf.mxu0 }
  0xcb   :  { %v271_v52 = vadd.f32 %v1314_v7, %v74_v49  ;;  %v363_v7 = vld [vmem:[%s1371_s3 + $0x40] sm:$0xff] }
  0xcc   :  { %v855_v8 = vpop.f32.mrf.mxu0 }
  0xcd   :  { %v286_v44 = vadd.f32 %v855_v8, %v89_v38  ;;  %v358_v8 = vld [vmem:[%s1371_s3 + $0x18] sm:$0xff] }
  0xce   :  { %v280_v9 = vpop.f32.mrf.mxu0 }
  0xcf   :  { %v281_v47 = vadd.f32 %v280_v9, %v84_v41  ;;  %v364_v9 = vld [vmem:[%s1371_s3 + $0x48] sm:$0xff] }
  0xd0   :  { %v858_v11 = vpop.f32.mrf.mxu0 }
  0xd1   :  { %v296_v39 = vadd.f32 %v858_v11, %v99_v33  ;;  %v365_v11 = vld [vmem:[%s1371_s3 + $0x50] sm:$0xff] }
  0xd2   :  { %v290_v13 = vpop.f32.mrf.mxu0 }
  0xd3   :  { %v291_v42 = vadd.f32 %v290_v13, %v94_v35  ;;  %v366_v13 = vld [vmem:[%s1371_s3 + $0x58] sm:$0xff] }
  0xd4   :  { %v861_v14 = vpop.f32.mrf.mxu0 }
  0xd5   :  { %v306_v36 = vadd.f32 %v861_v14, %v109_v26  ;;  %v367_v14 = vld [vmem:[%s1371_s3 + $0x60] sm:$0xff] }
  0xd6   :  { %v300_v16 = vpop.f32.mrf.mxu0 }
  0xd7   :  { %v301_v37 = vadd.f32 %v300_v16, %v104_v30  ;;  %v369_v16 = vld [vmem:[%s1371_s3 + $0x70] sm:$0xff] }
  0xd8   :  { %v864_v18 = vpop.f32.mrf.mxu0 }
  0xd9   :  { %v316_v32 = vadd.f32 %v864_v18, %v119_v20  ;;  %v390_v18 = vpop.permute.xlu0 %389 }
  0xda   :  { %v310_v19 = vpop.f32.mrf.mxu0 }
  0xdb   :  { %v311_v34 = vadd.f32 %v310_v19, %v114_v22  ;;  %v395_v19 = vpop.permute.xlu1 %394 }
  0xdc   :  { %v867_v21 = vpop.f32.mrf.mxu0 }
  0xdd   :  { %v326_v28 = vadd.f32 %v867_v21, %v129_v12  ;;  %v360_v12 = vld [vmem:[%s1371_s3 + $0x28] sm:$0xff]  ;;  %v400_v20 = vpop.permute.xlu0 %399 }
  0xde   :  { %v320_v23 = vpop.f32.mrf.mxu0 }
  0xdf   :  { %v321_v31 = vadd.f32 %v320_v23, %v124_v17  ;;  %v370_v17 = vld [vmem:[%s1371_s3 + $0x78] sm:$0xff]  ;;  %v405_v21 = vpop.permute.xlu1 %404 }
  0xe0   :  { %v870_v24 = vpop.f32.mrf.mxu0 }
  0xe1   :  { %v336_v25 = vadd.f32 %v870_v24, %v139_v10  ;;  %v359_v10 = vld [vmem:[%s1371_s3 + $0x20] sm:$0xff]  ;;  %v410_v22 = vpop.permute.xlu0 %409 }
  0xe2   :  { %v330_v27 = vpop.f32.mrf.mxu0 }
  0xe3   :  { %963 = vtanh.f32 %v336_v25  ;;  %v331_v29 = vadd.f32 %v330_v27, %v134_v15  ;;  %v368_v15 = vld [vmem:[%s1371_s3 + $0x68] sm:$0xff]  ;;  %v415_v23 = vpop.permute.xlu1 %414 }
  0xe5   :  { %965 = vtanh.f32 %v331_v29  ;;  %v420_v24 = vpop.permute.xlu0 %419 }
  0xe6   :  { %967 = vtanh.f32 %v326_v28 }
  0xe7   :  { %969 = vtanh.f32 %v321_v31  ;;  %v425_v25 = vpop.permute.xlu1 %424 }
  0xe8   :  { %971 = vtanh.f32 %v316_v32 }
  0xe9   :  { %973 = vtanh.f32 %v311_v34  ;;  %v430_v26 = vpop.permute.xlu0 %429 }
  0xea   :  { %975 = vtanh.f32 %v306_v36 }
  0xeb   :  { %977 = vtanh.f32 %v301_v37  ;;  %v435_v27 = vpop.permute.xlu1 %434 }
  0xec   :  { %979 = vtanh.f32 %v296_v39 }
  0xed   :  { %981 = vtanh.f32 %v291_v42  ;;  %v647_v28 = vpop.permute.xlu0 %646 }
  0xee   :  { %983 = vtanh.f32 %v286_v44 }
  0xef   :  { %985 = vtanh.f32 %v281_v47  ;;  %v652_v29 = vpop.permute.xlu1 %651 }
  0xf0   :  { %v964_v40 = vpop.eup %963  ;;  %987 = vtanh.f32 %v276_v50 }
  0xf1   :  { %871 = vmatprep.subr.mxu0 %v964_v40  ;;  %927 = vmatprep.subr.mxu1 %v964_v40  ;;  %989 = vtanh.f32 %v271_v52  ;;  %v440_v30 = vpop.permute.xlu0 %439 }
  0xf2   :  { %v966_v43 = vpop.eup %965  ;;  %872 = vmatpush3.msra.mxu0 %v964_v40  ;;  %943 = vmatpush3.msra.mxu1 %v964_v40  ;;  %991 = vtanh.f32 %v266_v55 }
  0xf3   :  { %873 = vmatprep.subr.mxu0 %v966_v43  ;;  %928 = vmatprep.subr.mxu1 %v966_v43  ;;  %v968_v45 = vpop.eup %967  ;;  %993 = vtanh.f32 %v261_v58  ;;  %v657_v31 = vpop.permute.xlu1 %656 }
  0xf4   :  { %874 = vmatpush3.msra.mxu0 %v966_v43  ;;  %944 = vmatpush3.msra.mxu1 %v966_v43  ;;  %v970_v48 = vpop.eup %969 }
  0xf5   :  { %875 = vmatprep.subr.mxu0 %v968_v45  ;;  %929 = vmatprep.subr.mxu1 %v968_v45  ;;  %v972_v51 = vpop.eup %971  ;;  %v445_v32 = vpop.permute.xlu0 %444 }
  0xf6   :  { %876 = vmatpush3.msra.mxu0 %v968_v45  ;;  %945 = vmatpush3.msra.mxu1 %v968_v45  ;;  %v974_v53 = vpop.eup %973 }
  0xf7   :  { %877 = vmatprep.subr.mxu0 %v970_v48  ;;  %930 = vmatprep.subr.mxu1 %v970_v48  ;;  %v976_v56 = vpop.eup %975  ;;  %v662_v33 = vpop.permute.xlu1 %661 }
  0xf8   :  { %878 = vmatpush3.msra.mxu0 %v970_v48  ;;  %946 = vmatpush3.msra.mxu1 %v970_v48  ;;  %v978_v59 = vpop.eup %977 }
  0xf9   :  { %879 = vmatprep.subr.mxu0 %v972_v51  ;;  %931 = vmatprep.subr.mxu1 %v972_v51  ;;  %v980_v60 = vpop.eup %979  ;;  %v450_v39 = vpop.permute.xlu0 %449 }
  0xfa   :  { %880 = vmatpush3.msra.mxu0 %v972_v51  ;;  %947 = vmatpush3.msra.mxu1 %v972_v51  ;;  %v982_v61 = vpop.eup %981 }
  0xfb   :  { %881 = vmatprep.subr.mxu0 %v974_v53  ;;  %932 = vmatprep.subr.mxu1 %v974_v53  ;;  %v984_v62 = vpop.eup %983  ;;  %v667_v43 = vpop.permute.xlu1 %666 }
  0xfc   :  { %882 = vmatpush3.msra.mxu0 %v974_v53  ;;  %948 = vmatpush3.msra.mxu1 %v974_v53  ;;  %v986_v63 = vpop.eup %985 }
  0xfd   :  { %883 = vmatprep.subr.mxu0 %v976_v56  ;;  %933 = vmatprep.subr.mxu1 %v976_v56  ;;  %v988_v0 = vpop.eup %987  ;;  %v455_v50 = vpop.permute.xlu0 %454 }
  0xfe   :  { %884 = vmatpush3.msra.mxu0 %v976_v56  ;;  %949 = vmatpush3.msra.mxu1 %v976_v56  ;;  %v990_v1 = vpop.eup %989 }
  0xff   :  { %885 = vmatprep.subr.mxu0 %v978_v59  ;;  %934 = vmatprep.subr.mxu1 %v978_v59  ;;  %v992_v2 = vpop.eup %991  ;;  %v672_v56 = vpop.permute.xlu1 %671 }
 0x100   :  { %886 = vmatpush3.msra.mxu0 %v978_v59  ;;  %950 = vmatpush3.msra.mxu1 %v978_v59  ;;  %v994_v3 = vpop.eup %993 }
 0x101   :  { %887 = vmatprep.subr.mxu0 %v980_v60  ;;  %935 = vmatprep.subr.mxu1 %v980_v60 }
 0x102   :  { %888 = vmatpush3.msra.mxu0 %v980_v60  ;;  %951 = vmatpush3.msra.mxu1 %v980_v60  ;;  %v460_v60 = vpop.permute.xlu0 %459 }
 0x103   :  { %889 = vmatprep.subr.mxu0 %v982_v61  ;;  %936 = vmatprep.subr.mxu1 %v982_v61 }
 0x104   :  { %890 = vmatpush3.msra.mxu0 %v982_v61  ;;  %952 = vmatpush3.msra.mxu1 %v982_v61 }
 0x105   :  { %891 = vmatprep.subr.mxu0 %v984_v62  ;;  %937 = vmatprep.subr.mxu1 %v984_v62 }
 0x106   :  { %892 = vmatpush3.msra.mxu0 %v984_v62  ;;  %953 = vmatpush3.msra.mxu1 %v984_v62 }
 0x107   :  { %893 = vmatprep.subr.mxu0 %v986_v63  ;;  %938 = vmatprep.subr.mxu1 %v986_v63 }
 0x108   :  { %894 = vmatpush3.msra.mxu0 %v986_v63  ;;  %954 = vmatpush3.msra.mxu1 %v986_v63 }
 0x109   :  { %895 = vmatprep.subr.mxu0 %v988_v0  ;;  %939 = vmatprep.subr.mxu1 %v988_v0 }
 0x10a   :  { %896 = vmatpush3.msra.mxu0 %v988_v0  ;;  %955 = vmatpush3.msra.mxu1 %v988_v0 }
 0x10b   :  { %897 = vmatprep.subr.mxu0 %v990_v1  ;;  %940 = vmatprep.subr.mxu1 %v990_v1 }
 0x10c   :  { %898 = vmatpush3.msra.mxu0 %v990_v1  ;;  %956 = vmatpush3.msra.mxu1 %v990_v1  ;;  %v677_v1 = vpop.permute.xlu1 %676 }
 0x10d   :  { %899 = vmatprep.subr.mxu0 %v992_v2  ;;  %941 = vmatprep.subr.mxu1 %v992_v2 }
 0x10e   :  { %900 = vmatpush3.msra.mxu0 %v992_v2  ;;  %957 = vmatpush3.msra.mxu1 %v992_v2 }
 0x10f   :  { %901 = vmatprep.subr.mxu0 %v994_v3  ;;  %942 = vmatprep.subr.mxu1 %v994_v3 }
 0x110   :  { %902 = vmatpush3.msra.mxu0 %v994_v3  ;;  %958 = vmatpush3.msra.mxu1 %v994_v3 }
 0x111   :  { %904 = vmatmul.mubr.f32.vlgmr.msra.gmra.mxu0 %v356_v4  ;;  %913 = vmatmul.mubr.f32.vlgmr.msra.gmra.mxu1 %v362_v5 }
 0x112   :  { %906 = vmatprep.mubr.f32.mxu0 %v357_v6  ;;  %915 = vmatprep.mubr.f32.mxu1 %v363_v7 }
 0x115   :  { %907 = vmatmul.mubr.f32.gmra.mxu0 %v358_v8  ;;  %916 = vmatmul.mubr.f32.gmra.mxu1 %v364_v9  ;;  %v465_v9 = vpop.permute.xlu0 %464 }
 0x116   :  { %909 = vmatprep.mubr.f32.mxu0 %v359_v10  ;;  %918 = vmatprep.mubr.f32.mxu1 %v365_v11 }
 0x119   :  { %910 = vmatmul.mubr.f32.gmra.mxu0 %v360_v12  ;;  %919 = vmatmul.mubr.f32.gmra.mxu1 %v366_v13  ;;  %v682_v13 = vpop.permute.xlu1 %681 }
 0x11a   :  { %921 = vmatprep.mubr.f32.mxu1 %v367_v14 }
 0x11d   :  { %922 = vmatmul.mubr.f32.gmra.mxu1 %v368_v15 }
 0x11e   :  { %924 = vmatprep.mubr.f32.mxu1 %v369_v16 }
 0x121   :  { %925 = vmatmul.mubr.f32.gmra.mxu1 %v370_v17 }
 0x1d1   :  { %v905_v34 = vpop.f32.mrf.mxu0  ;;  %v914_v35 = vpop.f32.mrf.mxu1 }
 0x1d2   :  { %v539_v36 = vadd.f32 %v905_v34, %v395_v19  ;;  %v569_v58 = vadd.f32 %v914_v35, %v425_v25 }
 0x1d3   :  { %v533_v37 = vpop.f32.mrf.mxu0  ;;  %v563_v38 = vpop.f32.mrf.mxu1 }
 0x1d4   :  { %v534_v40 = vadd.f32 %v533_v37, %v390_v18  ;;  %995 = vtanh.f32 %v539_v36  ;;  %v564_v54 = vadd.f32 %v563_v38, %v420_v24  ;;  %v687_v24 = vpop.permute.xlu0 %686 }
 0x1d5   :  { %v908_v41 = vpop.f32.mrf.mxu0  ;;  %v917_v42 = vpop.f32.mrf.mxu1 }
 0x1d6   :  { %997 = vtanh.f32 %v534_v40  ;;  %v549_v44 = vadd.f32 %v908_v41, %v405_v21  ;;  %v579_v63 = vadd.f32 %v917_v42, %v435_v27 }
 0x1d7   :  { %v543_v45 = vpop.f32.mrf.mxu0  ;;  %v573_v46 = vpop.f32.mrf.mxu1 }
 0x1d8   :  { %v544_v47 = vadd.f32 %v543_v45, %v400_v20  ;;  %999 = vtanh.f32 %v549_v44  ;;  %v574_v59 = vadd.f32 %v573_v46, %v430_v26  ;;  %v697_v36 = vpop.permute.xlu0 %696 }
 0x1d9   :  { %v911_v48 = vpop.f32.mrf.mxu0  ;;  %v920_v49 = vpop.f32.mrf.mxu1 }
 0x1da   :  { %1001 = vtanh.f32 %v544_v47  ;;  %v559_v51 = vadd.f32 %v911_v48, %v415_v23  ;;  %v589_v7 = vadd.f32 %v920_v49, %v445_v32 }
 0x1db   :  { %v553_v52 = vpop.f32.mrf.mxu0  ;;  %v583_v53 = vpop.f32.mrf.mxu1 }
 0x1dc   :  { %v554_v55 = vadd.f32 %v553_v52, %v410_v22  ;;  %1003 = vtanh.f32 %v559_v51  ;;  %v584_v3 = vadd.f32 %v583_v53, %v440_v30  ;;  %v707_v47 = vpop.permute.xlu0 %706 }
 0x1dd   :  { %v923_v57 = vpop.f32.mrf.mxu1 }
 0x1de   :  { %1005 = vtanh.f32 %v554_v55  ;;  %v599_v18 = vadd.f32 %v923_v57, %v455_v50 }
 0x1df   :  { %1007 = vtanh.f32 %v564_v54  ;;  %v593_v61 = vpop.f32.mrf.mxu1 }
 0x1e0   :  { %1009 = vtanh.f32 %v569_v58  ;;  %v594_v12 = vadd.f32 %v593_v61, %v450_v39  ;;  %v717_v58 = vpop.permute.xlu0 %716 }
 0x1e1   :  { %v996_v62 = vpop.eup %995  ;;  %1011 = vtanh.f32 %v574_v59  ;;  %v926_v4 = vpop.f32.mrf.mxu1 }
 0x1e2   :  { %v725_v6 = vmul.f32 %v996_v62, %v652_v29  ;;  %1013 = vtanh.f32 %v579_v63  ;;  %v609_v27 = vadd.f32 %v926_v4, %v465_v9  ;;  %v692_v29 = vpop.permute.xlu1 %691 }
 0x1e3   :  { %v998_v0 = vpop.eup %997  ;;  %1015 = vtanh.f32 %v584_v3  ;;  %v603_v14 = vpop.f32.mrf.mxu1 }
 0x1e4   :  { %v724_v2 = vmul.f32 %v998_v0, %v647_v28  ;;  %1017 = vtanh.f32 %v589_v7  ;;  %v604_v22 = vadd.f32 %v603_v14, %v460_v60 }
 0x1e5   :  { %v1000_v5 = vpop.eup %999  ;;  %1019 = vtanh.f32 %v594_v12 }
 0x1e6   :  { %v740_v10 = vadd.f32 %v725_v6, %v724_v2  ;;  %v727_v16 = vmul.f32 %v1000_v5, %v662_v33  ;;  %1021 = vtanh.f32 %v599_v18  ;;  %v702_v40 = vpop.permute.xlu1 %701  ;;  %v762_v6 = vstv %s1374_s6 }
 0x1e7   :  { %v1002_v8 = vpop.eup %1001  ;;  %1023 = vtanh.f32 %v604_v22 }
 0x1e8   :  { %v726_v11 = vmul.f32 %v1002_v8, %v657_v31  ;;  %1025 = vtanh.f32 %v609_v27 }
 0x1e9   :  { %v1004_v15 = vpop.eup %1003 }
 0x1ea   :  { %v741_v17 = vadd.f32 %v740_v10, %v726_v11  ;;  %v729_v25 = vmul.f32 %v1004_v15, %v672_v56  ;;  %v712_v51 = vpop.permute.xlu1 %711 }
 0x1eb   :  { %v1006_v19 = vpop.eup %1005 }
 0x1ec   :  { %v728_v20 = vmul.f32 %v1006_v19, %v667_v43  ;;  %v742_v21 = vadd.f32 %v741_v17, %v727_v16  ;;  %v1008_v23 = vpop.eup %1007 }
 0x1ed   :  { %v1010_v28 = vpop.eup %1009  ;;  %v730_v30 = vmul.f32 %v1008_v23, %v677_v1 }
 0x1ee   :  { %v743_v26 = vadd.f32 %v742_v21, %v728_v20  ;;  %v1012_v32 = vpop.eup %1011  ;;  %v731_v33 = vmul.f32 %v1010_v28, %v682_v13  ;;  %v722_v61 = vpop.permute.xlu1 %721 }
 0x1ef   :  { %v1014_v35 = vpop.eup %1013  ;;  %v732_v37 = vmul.f32 %v1012_v32, %v687_v24 }
 0x1f0   :  { %v744_v31 = vadd.f32 %v743_v26, %v729_v25  ;;  %v1016_v39 = vpop.eup %1015  ;;  %v733_v41 = vmul.f32 %v1014_v35, %v692_v29 }
 0x1f1   :  { %v1018_v43 = vpop.eup %1017  ;;  %v734_v44 = vmul.f32 %v1016_v39, %v697_v36 }
 0x1f2   :  { %v745_v34 = vadd.f32 %v744_v31, %v730_v30  ;;  %v1020_v46 = vpop.eup %1019  ;;  %v735_v48 = vmul.f32 %v1018_v43, %v702_v40 }
 0x1f3   :  { %v1022_v50 = vpop.eup %1021  ;;  %v736_v52 = vmul.f32 %v1020_v46, %v707_v47 }
 0x1f4   :  { %v746_v38 = vadd.f32 %v745_v34, %v731_v33  ;;  %v1024_v54 = vpop.eup %1023  ;;  %v737_v55 = vmul.f32 %v1022_v50, %v712_v51 }
 0x1f5   :  { %v1026_v57 = vpop.eup %1025  ;;  %v738_v59 = vmul.f32 %v1024_v54, %v717_v58 }
 0x1f6   :  { %v747_v42 = vadd.f32 %v746_v38, %v732_v37  ;;  %v739_v62 = vmul.f32 %v1026_v57, %v722_v61 }
 0x1f8   :  { %v748_v45 = vadd.f32 %v747_v42, %v733_v41 }
 0x1fa   :  { %v749_v49 = vadd.f32 %v748_v45, %v734_v44 }
 0x1fc   :  { %v750_v53 = vadd.f32 %v749_v49, %v735_v48 }
 0x1fe   :  { %v751_v56 = vadd.f32 %v750_v53, %v736_v52 }
 0x200   :  { %v752_v60 = vadd.f32 %v751_v56, %v737_v55 }
 0x202   :  { %v753_v63 = vadd.f32 %v752_v60, %v738_v59 }
 0x204   :  { %v754_v0 = vadd.f32 %v753_v63, %v739_v62 }
 0x206   :  { %v755_v1 = vrot.slane %v754_v0, 4 }
 0x208   :  { %v756_v2 = vadd.f32 %v755_v1, %v754_v0 }
 0x20a   :  { %v757_v3 = vrot.slane %v756_v2, 2 }
 0x20c   :  { %v758_v4 = vadd.f32 %v757_v3, %v756_v2 }
 0x20e   :  { %v759_v5 = vrot.slane %v758_v4, 1 }
 0x210   :  { %v760_v7 = vadd.f32 %v759_v5, %v758_v4 }
 0x212   :  { %v763_v8 = vadd.f32 %v762_v6, %v760_v7 }
 0x214   :  { %764 = vst [vmem:[#allocation3] sm:$0x1] %v763_v8 }
 0x215   :  { %1038 = shalt.err (!%p1035_p4)
}
 0x216   :  { %774 = dma.vmem_to_hbm [thread:$0]  %s772_s9, 16, %s1375_s7, [#allocation4]  }
 0x217   :  { %1047 = dma.done.wait [#allocation4], 16  }
 0x218   :  { %1048 = vsyncadd [#allocation4], 4294967280 }
 0x219   :  { %778 = vsyncpa [#allocation4], 1 }

</bundles_post_ra>
